<compile_context>
chip_gen: v7x
topology: tpu7x:2x2x1
jax: 0.10.0
libtpu: 0.0.40
codegen_flags: <defaults>
</compile_context>

<pallas_src>
import functools

import jax
import jax.numpy as jnp
from jax.experimental import pallas as pl
from jax.experimental.pallas import tpu as pltpu

# ---- deterministic hyper-loss configuration (mirrors module __init__ args) ----
CURVATURE = 1.0          # Poincare ball curvature c
POS_MARGIN = 1.0         # clustering loss positive margin
NEG_MARGIN = 2.5         # clustering loss negative margin
CENTRI_MARGIN = 0.5      # centripetal loss margin
WEIGHT_AND_LOSS = ((1.0, "ClusteringConstrastiveLoss"),
                   (1.0, "CentripetalContrastiveLoss"))
_EPS = 1e-7

_TB_MAX = 8192                       # max batch-columns per grid step
_VMEM_BUDGET = 36 * 1024 * 1024      # per-step working-set budget (headroom under 48 MiB)


def _acosh_1p(y):
    """acosh(1 + y), y >= 0, computed without the (1+y)^2 - 1 cancellation."""
    y = jnp.maximum(y, 0.0)
    # TODO(synk): jnp.log1p would gain a few more bits near y ~ 0; plain log is used
    # because it is guaranteed to lower in Mosaic and the hinge margins (>=0.5)
    # dwarf the remaining error.
    return jnp.log(1.0 + y + jnp.sqrt(y * (y + 2.0)))


def hyper_loss_kernel(anchor_ref, other_ref, masks_ref, out_ref,
                      *, c, pos_m, neg_m, centri_m, batch):
    """One batch tile of the pair-branch hyperbolic losses (feature-major layout).

    anchor_ref, other_ref : (D, TB) Poincare-ball embeddings (any float dtype).
    masks_ref             : (2, TB) f32; row 0 = label (pos mask), row 1 = 1 - label.
    out_ref               : (1, 2, 1) per-tile partial sums [clustering, centripetal].
    """
    i = pl.program_id(0)
    tb = anchor_ref.shape[1]

    u = anchor_ref[...].astype(jnp.float32)              # (D, TB)
    v = other_ref[...].astype(jnp.float32)

    # D-axis (sublane) reductions -> lane-dense (1, TB) per-example scalars.
    u2 = jnp.sum(u * u, axis=0, keepdims=True)
    v2 = jnp.sum(v * v, axis=0, keepdims=True)
    uv = jnp.sum(u * v, axis=0, keepdims=True)
    d2 = jnp.maximum(u2 + v2 - 2.0 * uv, 0.0)             # |u-v|^2 without a (D,TB) temp

    alpha = jnp.maximum(1.0 - c * u2, _EPS)
    beta = jnp.maximum(1.0 - c * v2, _EPS)
    inv_alpha = pl.reciprocal(alpha, approx=True)          # EUP slot
    inv_beta = pl.reciprocal(beta, approx=True)
    inv_sqrt_c = float(c) ** -0.5

    # Poincare distance: d(u,v) = acosh(1 + 2c|u-v|^2 / ((1-c|u|^2)(1-c|v|^2))) / sqrt(c)
    dist = _acosh_1p(2.0 * c * d2 * inv_alpha * inv_beta) * inv_sqrt_c
    # Hyperbolic norms: d(0,u) = acosh(1 + 2c|u|^2 / (1-c|u|^2)) / sqrt(c)
    norm_u = _acosh_1p(2.0 * c * u2 * inv_alpha) * inv_sqrt_c
    norm_v = _acosh_1p(2.0 * c * v2 * inv_beta) * inv_sqrt_c

    pos_mask = masks_ref[0:1, :]                            # (1, TB)
    neg_mask = masks_ref[1:2, :]

    # ClusteringContrastiveLoss (per example, before mean over batch).
    cluster = (pos_mask * jnp.maximum(dist - pos_m, 0.0)
               + neg_mask * jnp.maximum(neg_m - dist, 0.0))
    # CentripetalContrastiveLoss: anchor (child) norm should exceed other (parent) norm.
    centri = pos_mask * jnp.maximum(centri_m + norm_v - norm_u, 0.0)

    # Ragged last tile: columns past the true batch carry garbage -> select, don't multiply.
    col = jax.lax.broadcasted_iota(jnp.int32, (1, tb), 1) + i * tb
    valid = col < batch
    cluster = jnp.where(valid, cluster, 0.0)
    centri = jnp.where(valid, centri, 0.0)

    both = jnp.concatenate([cluster, centri], axis=0)        # (2, TB)
    out_ref[...] = jnp.sum(both, axis=1, keepdims=True).reshape(1, 2, 1)


def hyperbolic_loss(rep_anchor_t, rep_other_t, labels,
                    *, curvature=CURVATURE, weight_and_loss=WEIGHT_AND_LOSS):
    """Pair-branch forward of HyperbolicLoss: weighted sum of sub-losses.

    rep_anchor_t / rep_other_t are FEATURE-MAJOR (D, B) Poincare-ball embeddings
    (emit them transposed from the encoder; a caller holding (B, D) may pass x.T
    at the cost of one extra HBM pass).  labels is a length-B 0/1 vector.
    """
    D, B = rep_anchor_t.shape
    assert rep_other_t.shape == (D, B)

    # --- batch tile: biggest multiple of 128 whose double-buffered working set
    #     stays inside the VMEM budget (safe on v5e/v6e and v7x's 64 MiB VMEM). ---
    in_itemsize = jnp.dtype(rep_anchor_t.dtype).itemsize
    bytes_per_col = (2 * 2 * D * in_itemsize   # anchor+other input streams, 2 buffers each
                     + 2 * 8 * 4               # (2,TB) f32 mask tile (sublane-padded), 2 buffers
                     + 3 * D * 4)              # in-kernel f32 copies of u, v + one product temp
    tb_cap = max(int(_VMEM_BUDGET // bytes_per_col), 128)

    if B <= 128:
        TB = B                                           # single tile; block == full array dim
    else:
        tb = min(tb_cap, _TB_MAX, (B // 128) * 128)      # TB <= B so only the last tile is ragged
        if B >= 2048:                                    # >=4 tiles: v7x megacore + pipeline balance
            tb = min(tb, ((pl.cdiv(B, 4) + 127) // 128) * 128)
        TB = max(128, (tb // 128) * 128)
    num_tiles = pl.cdiv(B, TB)

    # Lane-dense mask stream (2, B): row 0 = label, row 1 = 1 - label.  No embedding pad/copy.
    lab = labels.reshape(1, B).astype(jnp.float32)
    masks = jnp.concatenate([lab, 1.0 - lab], axis=0)

    kernel = functools.partial(
        hyper_loss_kernel, c=float(curvature), pos_m=POS_MARGIN,
        neg_m=NEG_MARGIN, centri_m=CENTRI_MARGIN, batch=B)

    parts = pl.pallas_call(
        kernel,
        out_shape=jax.ShapeDtypeStruct((num_tiles, 2, 1), jnp.float32),
        grid_spec=pltpu.PrefetchScalarGridSpec(
            num_scalar_prefetch=0,
            grid=(num_tiles,),
            in_specs=[pl.BlockSpec((D, TB), lambda i: (0, i)),
                      pl.BlockSpec((D, TB), lambda i: (0, i)),
                      pl.BlockSpec((2, TB), lambda i: (0, i))],
            out_specs=pl.BlockSpec((1, 2, 1), lambda i: (i, 0, 0)),
        ),
        compiler_params=pltpu.CompilerParams(
            dimension_semantics=("parallel",),            # shards tiles over v7x's 2 TCs
            vmem_limit_bytes=48 * 1024 * 1024),           # <= v7x 64 MiB physical VMEM
    )(rep_anchor_t, rep_other_t, masks)

    # Final reduction + mean over the *original* batch size in plain JAX.
    sums = jnp.sum(parts, axis=(0, 2))                    # (2,) [clustering, centripetal]
    loss_by_name = {
        "ClusteringConstrastiveLoss": sums[0] / B,
        "CentripetalContrastiveLoss": sums[1] / B,
    }
    weighted_loss = 0.0
    for weight, loss_name in weight_and_loss:
        weighted_loss = weighted_loss + weight * loss_by_name[loss_name]
    return weighted_loss


# ------------------- synthetic "HierarchyTransformer" model (glue) -------------------
def encode_t(sentence_feature, params, curvature=CURVATURE):
    """Mean-pool -> linear -> expmap0, emitted feature-major (D, B). Plain JAX glue."""
    tok = sentence_feature["token_embeddings"]                 # (B, S, H)
    mask = sentence_feature["attention_mask"][..., None].astype(tok.dtype)
    pooled = (tok * mask).sum(axis=1) / jnp.maximum(mask.sum(axis=1), 1.0)   # (B, H)
    v = params["proj"].T @ pooled.T                            # (D, B) tangent vectors
    sqrt_c = jnp.sqrt(curvature)
    norm = jnp.maximum(jnp.linalg.norm(v, axis=0, keepdims=True), 1e-7)
    return jnp.tanh(sqrt_c * norm) * v / (sqrt_c * norm)       # inside the ball, (D, B)


def _expmap0_t(v, curvature=CURVATURE):
    sqrt_c = jnp.sqrt(curvature)
    norm = jnp.maximum(jnp.linalg.norm(v, axis=0, keepdims=True), 1e-7)
    return jnp.tanh(sqrt_c * norm) * v / (sqrt_c * norm)


def _reference_loss(u_t, v_t, lab):
    """Pure-JAX reference for the correctness check (same math, exact reciprocal)."""
    c = CURVATURE
    u = u_t.T.astype(jnp.float32)
    v = v_t.T.astype(jnp.float32)
    u2 = jnp.sum(u * u, -1, keepdims=True)
    v2 = jnp.sum(v * v, -1, keepdims=True)
    d2 = jnp.sum((u - v) ** 2, -1, keepdims=True)
    alpha = jnp.maximum(1.0 - c * u2, _EPS)
    beta = jnp.maximum(1.0 - c * v2, _EPS)
    dist = jnp.arccosh(1.0 + 2.0 * c * d2 / (alpha * beta)) / jnp.sqrt(c)
    nu = jnp.arccosh(1.0 + 2.0 * c * u2 / alpha) / jnp.sqrt(c)
    nv = jnp.arccosh(1.0 + 2.0 * c * v2 / beta) / jnp.sqrt(c)
    lab = lab.reshape(-1, 1).astype(jnp.float32)
    cluster = (lab * jnp.maximum(dist - POS_MARGIN, 0.0)
               + (1.0 - lab) * jnp.maximum(NEG_MARGIN - dist, 0.0)).mean()
    centri = (lab * jnp.maximum(CENTRI_MARGIN + nv - nu, 0.0)).mean()
    return WEIGHT_AND_LOSS[0][0] * cluster + WEIGHT_AND_LOSS[1][0] * centri


if __name__ == "__main__":
    key = jax.random.PRNGKey(0)
    # B deliberately not a multiple of 8/128 to exercise the in-kernel validity mask;
    # D=128 keeps the (D, TB) tiles sublane-aligned.
    B, S, H, D = 13, 8, 32, 128
    k1, k2, k3, k4 = jax.random.split(key, 4)

    # deterministic synthetic model parameters
    params = {"proj": jax.random.normal(k1, (H, D), jnp.float32) / jnp.sqrt(H)}

    sentence_features = [
        {"token_embeddings": jax.random.normal(k2, (B, S, H), jnp.float32),
         "attention_mask": jnp.ones((B, S), jnp.float32)},
        {"token_embeddings": jax.random.normal(k3, (B, S, H), jnp.float32),
         "attention_mask": jnp.ones((B, S), jnp.float32)},
    ]
    labels = (jax.random.uniform(k4, (B,)) > 0.5).astype(jnp.float32)

    # model forward (glue) -> feature-major Poincare-ball embeddings, streamed as bf16
    # (kernel upcasts to f32 internally; halves HBM bytes moved).
    rep_anchor_t = encode_t(sentence_features[0], params).astype(jnp.bfloat16)
    rep_other_t = encode_t(sentence_features[1], params).astype(jnp.bfloat16)

    loss = hyperbolic_loss(rep_anchor_t, rep_other_t, labels)
    jax.block_until_ready(loss)
    ref = _reference_loss(rep_anchor_t, rep_other_t, labels)
    assert jnp.allclose(loss, ref, rtol=1e-2, atol=2e-3), (loss, ref)

    # Second check: multi-tile grid with a ragged last tile (B2 = 200 > 128).
    ka, kb, kc = jax.random.split(jax.random.PRNGKey(1), 3)
    B2 = 200
    rep_a2 = _expmap0_t(0.1 * jax.random.normal(ka, (D, B2), jnp.float32)).astype(jnp.bfloat16)
    rep_o2 = _expmap0_t(0.1 * jax.random.normal(kb, (D, B2), jnp.float32)).astype(jnp.bfloat16)
    labels2 = (jax.random.uniform(kc, (B2,)) > 0.5).astype(jnp.float32)
    loss2 = hyperbolic_loss(rep_a2, rep_o2, labels2)
    jax.block_until_ready(loss2)
    ref2 = _reference_loss(rep_a2, rep_o2, labels2)
    assert jnp.allclose(loss2, ref2, rtol=1e-2, atol=2e-3), (loss2, ref2)

    print("KERNEL_OK")
</pallas_src>

<mosaic_0001>
module attributes {stable_mosaic.version = 11 : i64} {
  func.func @hyper_loss_kernel(%arg0: i32, %arg1: memref<128x13xbf16, #tpu.memory_space<vmem>>, %arg2: memref<128x13xbf16, #tpu.memory_space<vmem>>, %arg3: memref<2x13xf32, #tpu.memory_space<vmem>>, %arg4: memref<1x2x1xf32, #tpu.memory_space<vmem>>) attributes {dimension_semantics = [#tpu.dimension_semantics<parallel>], iteration_bounds = array<i64: 1>, scalar_prefetch = 0 : i64, scratch_operands = 0 : i64, tpu.core_type = #tpu.core_type<tc>, window_params = [{transform_indices = @transform_0, window_bounds = array<i64: 128, 13>}, {transform_indices = @transform_1, window_bounds = array<i64: 128, 13>}, {transform_indices = @transform_2, window_bounds = array<i64: 2, 13>}, {transform_indices = @transform_3, window_bounds = array<i64: 1, 2, 1>}]} {
    %c0 = arith.constant 0 : index
    %c0_0 = arith.constant 0 : index
    %0 = vector.load %arg1[%c0, %c0_0] : memref<128x13xbf16, #tpu.memory_space<vmem>>, vector<128x13xbf16>
    %1 = arith.extf %0 : vector<128x13xbf16> to vector<128x13xf32>
    %c0_1 = arith.constant 0 : index
    %c0_2 = arith.constant 0 : index
    %2 = vector.load %arg2[%c0_1, %c0_2] : memref<128x13xbf16, #tpu.memory_space<vmem>>, vector<128x13xbf16>
    %3 = arith.extf %2 : vector<128x13xbf16> to vector<128x13xf32>
    %4 = arith.mulf %1, %1 : vector<128x13xf32>
    %cst = arith.constant dense<0.000000e+00> : vector<13xf32>
    %5 = vector.multi_reduction <add>, %4, %cst [0] : vector<128x13xf32> to vector<13xf32>
    %6 = vector.shape_cast %5 : vector<13xf32> to vector<1x13xf32>
    %7 = arith.mulf %3, %3 : vector<128x13xf32>
    %cst_3 = arith.constant dense<0.000000e+00> : vector<13xf32>
    %8 = vector.multi_reduction <add>, %7, %cst_3 [0] : vector<128x13xf32> to vector<13xf32>
    %9 = vector.shape_cast %8 : vector<13xf32> to vector<1x13xf32>
    %10 = arith.mulf %1, %3 : vector<128x13xf32>
    %cst_4 = arith.constant dense<0.000000e+00> : vector<13xf32>
    %11 = vector.multi_reduction <add>, %10, %cst_4 [0] : vector<128x13xf32> to vector<13xf32>
    %12 = vector.shape_cast %11 : vector<13xf32> to vector<1x13xf32>
    %13 = arith.addf %6, %9 : vector<1x13xf32>
    %cst_5 = arith.constant 2.000000e+00 : f32
    %14 = vector.broadcast %cst_5 : f32 to vector<1x13xf32>
    %15 = arith.mulf %14, %12 : vector<1x13xf32>
    %16 = arith.subf %13, %15 : vector<1x13xf32>
    %cst_6 = arith.constant 0.000000e+00 : f32
    %17 = vector.broadcast %cst_6 : f32 to vector<1x13xf32>
    %18 = arith.maximumf %16, %17 : vector<1x13xf32>
    %cst_7 = arith.constant 1.000000e+00 : f32
    %19 = vector.broadcast %cst_7 : f32 to vector<1x13xf32>
    %20 = arith.mulf %19, %6 : vector<1x13xf32>
    %cst_8 = arith.constant 1.000000e+00 : f32
    %21 = vector.broadcast %cst_8 : f32 to vector<1x13xf32>
    %22 = arith.subf %21, %20 : vector<1x13xf32>
    %cst_9 = arith.constant 1.000000e-07 : f32
    %23 = vector.broadcast %cst_9 : f32 to vector<1x13xf32>
    %24 = arith.maximumf %22, %23 : vector<1x13xf32>
    %cst_10 = arith.constant 1.000000e+00 : f32
    %25 = vector.broadcast %cst_10 : f32 to vector<1x13xf32>
    %26 = arith.mulf %25, %9 : vector<1x13xf32>
    %cst_11 = arith.constant 1.000000e+00 : f32
    %27 = vector.broadcast %cst_11 : f32 to vector<1x13xf32>
    %28 = arith.subf %27, %26 : vector<1x13xf32>
    %cst_12 = arith.constant 1.000000e-07 : f32
    %29 = vector.broadcast %cst_12 : f32 to vector<1x13xf32>
    %30 = arith.maximumf %28, %29 : vector<1x13xf32>
    %31 = tpu.reciprocal %24 {approx = true} : vector<1x13xf32> -> vector<1x13xf32>
    %32 = tpu.reciprocal %30 {approx = true} : vector<1x13xf32> -> vector<1x13xf32>
    %cst_13 = arith.constant 2.000000e+00 : f32
    %33 = vector.broadcast %cst_13 : f32 to vector<1x13xf32>
    %34 = arith.mulf %33, %18 : vector<1x13xf32>
    %35 = arith.mulf %34, %31 : vector<1x13xf32>
    %36 = arith.mulf %35, %32 : vector<1x13xf32>
    %cst_14 = arith.constant 0.000000e+00 : f32
    %37 = vector.broadcast %cst_14 : f32 to vector<1x13xf32>
    %38 = arith.maximumf %36, %37 : vector<1x13xf32>
    %cst_15 = arith.constant 1.000000e+00 : f32
    %39 = vector.broadcast %cst_15 : f32 to vector<1x13xf32>
    %40 = arith.addf %39, %38 : vector<1x13xf32>
    %cst_16 = arith.constant 2.000000e+00 : f32
    %41 = vector.broadcast %cst_16 : f32 to vector<1x13xf32>
    %42 = arith.addf %38, %41 : vector<1x13xf32>
    %43 = arith.mulf %38, %42 : vector<1x13xf32>
    %44 = math.sqrt %43 : vector<1x13xf32>
    %45 = arith.addf %40, %44 : vector<1x13xf32>
    %46 = math.log %45 : vector<1x13xf32>
    %cst_17 = arith.constant 1.000000e+00 : f32
    %47 = vector.broadcast %cst_17 : f32 to vector<1x13xf32>
    %48 = arith.mulf %46, %47 : vector<1x13xf32>
    %cst_18 = arith.constant 2.000000e+00 : f32
    %49 = vector.broadcast %cst_18 : f32 to vector<1x13xf32>
    %50 = arith.mulf %49, %6 : vector<1x13xf32>
    %51 = arith.mulf %50, %31 : vector<1x13xf32>
    %cst_19 = arith.constant 0.000000e+00 : f32
    %52 = vector.broadcast %cst_19 : f32 to vector<1x13xf32>
    %53 = arith.maximumf %51, %52 : vector<1x13xf32>
    %cst_20 = arith.constant 1.000000e+00 : f32
    %54 = vector.broadcast %cst_20 : f32 to vector<1x13xf32>
    %55 = arith.addf %54, %53 : vector<1x13xf32>
    %cst_21 = arith.constant 2.000000e+00 : f32
    %56 = vector.broadcast %cst_21 : f32 to vector<1x13xf32>
    %57 = arith.addf %53, %56 : vector<1x13xf32>
    %58 = arith.mulf %53, %57 : vector<1x13xf32>
    %59 = math.sqrt %58 : vector<1x13xf32>
    %60 = arith.addf %55, %59 : vector<1x13xf32>
    %61 = math.log %60 : vector<1x13xf32>
    %cst_22 = arith.constant 1.000000e+00 : f32
    %62 = vector.broadcast %cst_22 : f32 to vector<1x13xf32>
    %63 = arith.mulf %61, %62 : vector<1x13xf32>
    %cst_23 = arith.constant 2.000000e+00 : f32
    %64 = vector.broadcast %cst_23 : f32 to vector<1x13xf32>
    %65 = arith.mulf %64, %9 : vector<1x13xf32>
    %66 = arith.mulf %65, %32 : vector<1x13xf32>
    %cst_24 = arith.constant 0.000000e+00 : f32
    %67 = vector.broadcast %cst_24 : f32 to vector<1x13xf32>
    %68 = arith.maximumf %66, %67 : vector<1x13xf32>
    %cst_25 = arith.constant 1.000000e+00 : f32
    %69 = vector.broadcast %cst_25 : f32 to vector<1x13xf32>
    %70 = arith.addf %69, %68 : vector<1x13xf32>
    %cst_26 = arith.constant 2.000000e+00 : f32
    %71 = vector.broadcast %cst_26 : f32 to vector<1x13xf32>
    %72 = arith.addf %68, %71 : vector<1x13xf32>
    %73 = arith.mulf %68, %72 : vector<1x13xf32>
    %74 = math.sqrt %73 : vector<1x13xf32>
    %75 = arith.addf %70, %74 : vector<1x13xf32>
    %76 = math.log %75 : vector<1x13xf32>
    %cst_27 = arith.constant 1.000000e+00 : f32
    %77 = vector.broadcast %cst_27 : f32 to vector<1x13xf32>
    %78 = arith.mulf %76, %77 : vector<1x13xf32>
    %c0_28 = arith.constant 0 : index
    %c0_29 = arith.constant 0 : index
    %79 = vector.load %arg3[%c0_28, %c0_29] : memref<2x13xf32, #tpu.memory_space<vmem>>, vector<1x13xf32>
    %c1 = arith.constant 1 : index
    %c0_30 = arith.constant 0 : index
    %80 = vector.load %arg3[%c1, %c0_30] : memref<2x13xf32, #tpu.memory_space<vmem>>, vector<1x13xf32>
    %cst_31 = arith.constant 1.000000e+00 : f32
    %81 = vector.broadcast %cst_31 : f32 to vector<1x13xf32>
    %82 = arith.subf %48, %81 : vector<1x13xf32>
    %cst_32 = arith.constant 0.000000e+00 : f32
    %83 = vector.broadcast %cst_32 : f32 to vector<1x13xf32>
    %84 = arith.maximumf %82, %83 : vector<1x13xf32>
    %85 = arith.mulf %79, %84 : vector<1x13xf32>
    %cst_33 = arith.constant 2.500000e+00 : f32
    %86 = vector.broadcast %cst_33 : f32 to vector<1x13xf32>
    %87 = arith.subf %86, %48 : vector<1x13xf32>
    %cst_34 = arith.constant 0.000000e+00 : f32
    %88 = vector.broadcast %cst_34 : f32 to vector<1x13xf32>
    %89 = arith.maximumf %87, %88 : vector<1x13xf32>
    %90 = arith.mulf %80, %89 : vector<1x13xf32>
    %91 = arith.addf %85, %90 : vector<1x13xf32>
    %cst_35 = arith.constant 5.000000e-01 : f32
    %92 = vector.broadcast %cst_35 : f32 to vector<1x13xf32>
    %93 = arith.addf %92, %78 : vector<1x13xf32>
    %94 = arith.subf %93, %63 : vector<1x13xf32>
    %cst_36 = arith.constant 0.000000e+00 : f32
    %95 = vector.broadcast %cst_36 : f32 to vector<1x13xf32>
    %96 = arith.maximumf %94, %95 : vector<1x13xf32>
    %97 = arith.mulf %79, %96 : vector<1x13xf32>
    %98 = tpu.iota {dimensions = array<i32: 1>} : vector<1x13xi32>
    %c13_i32 = arith.constant 13 : i32
    %99 = arith.muli %arg0, %c13_i32 : i32
    %100 = vector.broadcast %99 : i32 to vector<1x13xi32>
    %101 = arith.addi %98, %100 : vector<1x13xi32>
    %c13_i32_37 = arith.constant 13 : i32
    %102 = vector.broadcast %c13_i32_37 : i32 to vector<1x13xi32>
    %103 = arith.cmpi slt, %101, %102 : vector<1x13xi32>
    %cst_38 = arith.constant 0.000000e+00 : f32
    %104 = vector.broadcast %cst_38 : f32 to vector<1x13xf32>
    %105 = arith.select %103, %91, %104 : vector<1x13xi1>, vector<1x13xf32>
    %cst_39 = arith.constant 0.000000e+00 : f32
    %106 = vector.broadcast %cst_39 : f32 to vector<1x13xf32>
    %107 = arith.select %103, %97, %106 : vector<1x13xi1>, vector<1x13xf32>
    %108 = tpu.concatenate %105, %107 in 0 : vector<1x13xf32>, vector<1x13xf32> -> vector<2x13xf32>
    %cst_40 = arith.constant dense<0.000000e+00> : vector<2xf32>
    %109 = vector.multi_reduction <add>, %108, %cst_40 [1] : vector<2x13xf32> to vector<2xf32>
    %110 = vector.shape_cast %109 : vector<2xf32> to vector<2x1xf32>
    %111 = vector.shape_cast %110 : vector<2x1xf32> to vector<1x2x1xf32>
    %c0_41 = arith.constant 0 : index
    %c0_42 = arith.constant 0 : index
    %c0_43 = arith.constant 0 : index
    %112 = vector.load %arg4[%c0_41, %c0_42, %c0_43] : memref<1x2x1xf32, #tpu.memory_space<vmem>>, vector<1x2x1xf32>
    tpu.vector_store %arg4[%c0_41, %c0_42, %c0_43], %111 {strides = array<i32>} : memref<1x2x1xf32, #tpu.memory_space<vmem>>, vector<1x2x1xf32>,
    return
  }
  func.func @transform_0(%arg0: i32) -> (i32, i32) {
    %c0_i32 = arith.constant 0 : i32
    %c0_i32_0 = arith.constant 0 : i32
    return %c0_i32, %arg0 : i32, i32
  }
  func.func @transform_1(%arg0: i32) -> (i32, i32) {
    %c0_i32 = arith.constant 0 : i32
    %c0_i32_0 = arith.constant 0 : i32
    return %c0_i32, %arg0 : i32, i32
  }
  func.func @transform_2(%arg0: i32) -> (i32, i32) {
    %c0_i32 = arith.constant 0 : i32
    %c0_i32_0 = arith.constant 0 : i32
    return %c0_i32, %arg0 : i32, i32
  }
  func.func @transform_3(%arg0: i32) -> (i32, i32, i32) {
    %c0_i32 = arith.constant 0 : i32
    %c0_i32_0 = arith.constant 0 : i32
    %c0_i32_1 = arith.constant 0 : i32
    return %arg0, %c0_i32, %c0_i32_0 : i32, i32, i32
  }
}

</mosaic_0001>

<bundles_post_ra>
// kernel: tpu_custom_call.1
= control target key start
LH: loop header
LB: loop body
LE: loop exit
PB: predicated region body
PF: predicated region fallthrough
CT: control target
= control target key end

     0   :  { %vm94_vm0 = vcmask 105472   ;;  %vm321_vm8 = vcmask 1040384   ;;  %vm323_vm9 = vcmask 99328   ;;  %vm327_vm10 = vcmask 1024   ;;  %s713_s0 = inlined_call_operand.vmem [shape: bf16[128,13], index: 0, kind: input, shape index: {}]   ;;  %s714_s1 = inlined_call_operand.vmem [shape: bf16[128,13], index: 1, kind: input, shape index: {}]   ;;  %s715_s2 = inlined_call_operand.vmem [shape: f32[2,13], index: 2, kind: input, shape index: {}]   ;;  %s716_s3 = inlined_call_operand.vmem [shape: f32[1,2,1], index: 3, kind: output, shape index: {}]  }
   0x1   :  { %v335_v0 = vld [vmem:[%s713_s0] sm:$0xff]   ;;  %v398_v1 = vld [vmem:[%s713_s0 + $0x8] sm:$0xff]   ;;  %v399_v5 = vld [vmem:[%s713_s0 + $0x10] sm:$0xff]  }
   0x2   :  { %v454_v2 = vunpack.c.l.bf16 %v335_v0  ;;  %v456_v3 = vunpack.c.h.bf16 %v335_v0  ;;  %v458_v4 = vunpack.c.l.bf16 %v398_v1  ;;  %v463_v6 = vunpack.c.h.bf16 %v398_v1  ;;  %v400_v7 = vld [vmem:[%s713_s0 + $0x18] sm:$0xff]   ;;  %v401_v8 = vld [vmem:[%s713_s0 + $0x20] sm:$0xff]   ;;  %v402_v9 = vld [vmem:[%s713_s0 + $0x28] sm:$0xff]  }
   0x3   :  { %v474_v10 = vunpack.c.l.bf16 %v399_v5  ;;  %v403_v11 = vld [vmem:[%s713_s0 + $0x30] sm:$0xff]   ;;  %v404_v12 = vld [vmem:[%s713_s0 + $0x38] sm:$0xff]   ;;  %v488_v16 = vunpack.c.h.bf16 %v399_v5  ;;  %v490_v17 = vunpack.c.l.bf16 %v400_v7  ;;  %v492_v18 = vunpack.c.h.bf16 %v400_v7  ;;  %v367_v22 = vld [vmem:[%s714_s1] sm:$0xff]  }
   0x4   :  { %v78_v13 = vmul.f32 %v454_v2, %v454_v2  ;;  %v79_v14 = vmul.f32 %v456_v3, %v456_v3  ;;  %v80_v15 = vmul.f32 %v458_v4, %v458_v4  ;;  %v494_v19 = vunpack.c.l.bf16 %v401_v8  ;;  %v405_v23 = vld [vmem:[%s714_s1 + $0x8] sm:$0xff]   ;;  %v406_v29 = vld [vmem:[%s714_s1 + $0x10] sm:$0xff]   ;;  %v407_v30 = vld [vmem:[%s714_s1 + $0x18] sm:$0xff]  }
   0x5   :  { %v496_v20 = vunpack.c.h.bf16 %v401_v8  ;;  %v498_v21 = vunpack.c.l.bf16 %v402_v9  ;;  %v81_v24 = vmul.f32 %v463_v6, %v463_v6  ;;  %v508_v25 = vunpack.c.h.bf16 %v402_v9  ;;  %v408_v38 = vld [vmem:[%s714_s1 + $0x20] sm:$0xff]   ;;  %v409_v47 = vld [vmem:[%s714_s1 + $0x28] sm:$0xff]   ;;  %v410_v51 = vld [vmem:[%s714_s1 + $0x30] sm:$0xff]  }
   0x6   :  { %v510_v26 = vunpack.c.l.bf16 %v403_v11  ;;  %v512_v27 = vunpack.c.h.bf16 %v403_v11  ;;  %v514_v28 = vunpack.c.l.bf16 %v404_v12  ;;  %v82_v31 = vmul.f32 %v474_v10, %v474_v10  ;;  %v411_v0 = vld [vmem:[%s714_s1 + $0x38] sm:$0xff]  }
   0x7   :  { %v95_v32 = vsel %vm94_vm0, %v78_v13, 0.0  ;;  %v96_v33 = vsel %vm94_vm0, %v79_v14, 0.0  ;;  %v98_v34 = vsel %vm94_vm0, %v80_v15, 0.0  ;;  %v527_v35 = vunpack.c.l.bf16 %v367_v22 }
   0x8   :  { %v529_v36 = vunpack.c.h.bf16 %v367_v22  ;;  %v531_v37 = vunpack.c.l.bf16 %v405_v23  ;;  %v97_v39 = vadd.f32 %v96_v33, %v95_v32  ;;  %v536_v40 = vunpack.c.h.bf16 %v404_v12 }
   0x9   :  { %v538_v41 = vunpack.c.h.bf16 %v405_v23  ;;  %v83_v42 = vmul.f32 %v488_v16, %v488_v16  ;;  %v100_v43 = vsel %vm94_vm0, %v81_v24, 0.0  ;;  %v543_v44 = vunpack.c.l.bf16 %v406_v29 }
   0xa   :  { %v545_v45 = vunpack.c.h.bf16 %v406_v29  ;;  %v547_v46 = vunpack.c.l.bf16 %v407_v30  ;;  %v99_v48 = vadd.f32 %v98_v34, %v97_v39  ;;  %v552_v49 = vunpack.c.h.bf16 %v407_v30 }
   0xb   :  { %v554_v50 = vunpack.c.l.bf16 %v408_v38  ;;  %v84_v52 = vmul.f32 %v490_v17, %v490_v17  ;;  %v102_v53 = vsel %vm94_vm0, %v82_v31, 0.0  ;;  %v132_v55 = vmul.f32 %v527_v35, %v527_v35 }
   0xc   :  { %v101_v54 = vadd.f32 %v100_v43, %v99_v48  ;;  %v133_v56 = vmul.f32 %v529_v36, %v529_v36  ;;  %v134_v57 = vmul.f32 %v531_v37, %v531_v37  ;;  %v568_v58 = vunpack.c.h.bf16 %v408_v38 }
   0xd   :  { %v570_v59 = vunpack.c.l.bf16 %v409_v47  ;;  %v85_v60 = vmul.f32 %v492_v18, %v492_v18  ;;  %v104_v61 = vsel %vm94_vm0, %v83_v42, 0.0  ;;  %v575_v62 = vunpack.c.h.bf16 %v409_v47 }
   0xe   :  { %v577_v63 = vunpack.c.l.bf16 %v410_v51  ;;  %v103_v1 = vadd.f32 %v102_v53, %v101_v54  ;;  %v135_v5 = vmul.f32 %v538_v41, %v538_v41  ;;  %v584_v7 = vunpack.c.h.bf16 %v410_v51 }
   0xf   :  { %v86_v8 = vmul.f32 %v494_v19, %v494_v19  ;;  %v106_v9 = vsel %vm94_vm0, %v84_v52, 0.0  ;;  %v136_v11 = vmul.f32 %v543_v44, %v543_v44  ;;  %v148_v13 = vsel %vm94_vm0, %v132_v55, 0.0 }
  0x10   :  { %v105_v12 = vadd.f32 %v104_v61, %v103_v1  ;;  %v149_v14 = vsel %vm94_vm0, %v133_v56, 0.0  ;;  %v151_v15 = vsel %vm94_vm0, %v134_v57, 0.0  ;;  %v594_v22 = vunpack.c.l.bf16 %v411_v0 }
  0x11   :  { %v87_v23 = vmul.f32 %v496_v20, %v496_v20  ;;  %v108_v24 = vsel %vm94_vm0, %v85_v60, 0.0  ;;  %v150_v29 = vadd.f32 %v149_v14, %v148_v13  ;;  %v599_v30 = vunpack.c.h.bf16 %v411_v0 }
  0x12   :  { %v107_v31 = vadd.f32 %v106_v9, %v105_v12  ;;  %v137_v32 = vmul.f32 %v545_v45, %v545_v45  ;;  %v153_v33 = vsel %vm94_vm0, %v135_v5, 0.0  ;;  %v88_v34 = vmul.f32 %v498_v21, %v498_v21 }
  0x13   :  { %v89_v38 = vmul.f32 %v508_v25, %v508_v25  ;;  %v110_v39 = vsel %vm94_vm0, %v86_v8, 0.0  ;;  %v152_v42 = vadd.f32 %v151_v15, %v150_v29  ;;  %v90_v43 = vmul.f32 %v510_v26, %v510_v26 }
  0x14   :  { %v109_v47 = vadd.f32 %v108_v24, %v107_v31  ;;  %v138_v48 = vmul.f32 %v547_v46, %v547_v46  ;;  %v155_v51 = vsel %vm94_vm0, %v136_v11, 0.0  ;;  %v91_v52 = vmul.f32 %v512_v27, %v512_v27 }
  0x15   :  { %v92_v53 = vmul.f32 %v514_v28, %v514_v28  ;;  %v112_v54 = vsel %vm94_vm0, %v87_v23, 0.0  ;;  %v154_v55 = vadd.f32 %v153_v33, %v152_v42  ;;  %v139_v57 = vmul.f32 %v552_v49, %v552_v49 }
  0x16   :  { %v111_v56 = vadd.f32 %v110_v39, %v109_v47  ;;  %v157_v60 = vsel %vm94_vm0, %v137_v32, 0.0  ;;  %v185_v61 = vmul.f32 %v527_v35, %v454_v2  ;;  %v114_v0 = vsel %vm94_vm0, %v88_v34, 0.0 }
  0x17   :  { %v156_v1 = vadd.f32 %v155_v51, %v154_v55  ;;  %v186_v5 = vmul.f32 %v529_v36, %v456_v3  ;;  %v187_v8 = vmul.f32 %v531_v37, %v458_v4  ;;  %v93_v9 = vmul.f32 %v536_v40, %v536_v40 }
  0x18   :  { %v113_v11 = vadd.f32 %v112_v54, %v111_v56  ;;  %v140_v12 = vmul.f32 %v554_v50, %v554_v50  ;;  %v159_v13 = vsel %vm94_vm0, %v138_v48, 0.0  ;;  %v116_v2 = vsel %vm94_vm0, %v89_v38, 0.0 }
  0x19   :  { %v118_v35 = vsel %vm94_vm0, %v90_v43, 0.0  ;;  %v158_v14 = vadd.f32 %v157_v60, %v156_v1  ;;  %v188_v3 = vmul.f32 %v538_v41, %v463_v6  ;;  %v141_v4 = vmul.f32 %v568_v58, %v568_v58 }
  0x1a   :  { %v115_v36 = vadd.f32 %v114_v0, %v113_v11  ;;  %v161_v37 = vsel %vm94_vm0, %v139_v57, 0.0  ;;  %v201_v15 = vsel %vm94_vm0, %v185_v61, 0.0  ;;  %v189_v24 = vmul.f32 %v543_v44, %v474_v10 }
  0x1b   :  { %v160_v23 = vadd.f32 %v159_v13, %v158_v14  ;;  %v202_v29 = vsel %vm94_vm0, %v186_v5, 0.0  ;;  %v204_v31 = vsel %vm94_vm0, %v187_v8, 0.0  ;;  %v142_v6 = vmul.f32 %v570_v59, %v570_v59 }
  0x1c   :  { %v117_v32 = vadd.f32 %v116_v2, %v115_v36  ;;  %v163_v41 = vsel %vm94_vm0, %v140_v12, 0.0  ;;  %v203_v33 = vadd.f32 %v202_v29, %v201_v15  ;;  %v120_v34 = vsel %vm94_vm0, %v91_v52, 0.0 }
  0x1d   :  { %v162_v38 = vadd.f32 %v161_v37, %v160_v23  ;;  %v190_v39 = vmul.f32 %v545_v45, %v488_v16  ;;  %v206_v42 = vsel %vm94_vm0, %v188_v3, 0.0  ;;  %v143_v44 = vmul.f32 %v575_v62, %v575_v62 }
  0x1e   :  { %v119_v10 = vadd.f32 %v118_v35, %v117_v32  ;;  %v165_v43 = vsel %vm94_vm0, %v141_v4, 0.0  ;;  %v205_v47 = vadd.f32 %v204_v31, %v203_v33  ;;  %v122_v48 = vsel %vm94_vm0, %v92_v53, 0.0 }
  0x1f   :  { %v164_v51 = vadd.f32 %v163_v41, %v162_v38  ;;  %v191_v54 = vmul.f32 %v547_v46, %v490_v17  ;;  %v208_v52 = vsel %vm94_vm0, %v189_v24, 0.0  ;;  %v144_v16 = vmul.f32 %v577_v63, %v577_v63 }
  0x20   :  { %v121_v55 = vadd.f32 %v120_v34, %v119_v10  ;;  %v167_v45 = vsel %vm94_vm0, %v142_v6, 0.0  ;;  %v207_v56 = vadd.f32 %v206_v42, %v205_v47  ;;  %v124_v57 = vsel %vm94_vm0, %v93_v9, 0.0 }
  0x21   :  { %v166_v60 = vadd.f32 %v165_v43, %v164_v51  ;;  %v192_v61 = vmul.f32 %v552_v49, %v492_v18  ;;  %v210_v53 = vsel %vm94_vm0, %v190_v39, 0.0  ;;  %v145_v17 = vmul.f32 %v584_v7, %v584_v7 }
  0x22   :  { %v123_v0 = vadd.f32 %v122_v48, %v121_v55  ;;  %v169_v46 = vsel %vm94_vm0, %v143_v44, 0.0  ;;  %v209_v1 = vadd.f32 %v208_v52, %v207_v56  ;;  %v193_v8 = vmul.f32 %v554_v50, %v494_v19 }
  0x23   :  { %v168_v5 = vadd.f32 %v167_v45, %v166_v60  ;;  %v212_v11 = vsel %vm94_vm0, %v191_v54, 0.0  ;;  %v146_v12 = vmul.f32 %v594_v22, %v594_v22  ;;  %v171_v18 = vsel %vm94_vm0, %v144_v16, 0.0 }
  0x24   :  { %v125_v9 = vadd.f32 %v124_v57, %v123_v0  ;;  %v211_v49 = vadd.f32 %v210_v53, %v209_v1  ;;  %v194_v2 = vmul.f32 %v568_v58, %v496_v20  ;;  %v214_v35 = vsel %vm94_vm0, %v192_v61, 0.0 }
  0x25   :  { %v170_v13 = vadd.f32 %v169_v46, %v168_v5  ;;  %v147_v3 = vmul.f32 %v599_v30, %v599_v30  ;;  %v173_v19 = vsel %vm94_vm0, %v145_v17, 0.0  ;;  %v195_v4 = vmul.f32 %v570_v59, %v498_v21 }
  0x26   :  { %v126_v14 = vrot.slane %v125_v9, 4  ;;  %v213_v50 = vadd.f32 %v212_v11, %v211_v49  ;;  %v216_v37 = vsel %vm94_vm0, %v193_v8, 0.0  ;;  %v175_v23 = vsel %vm94_vm0, %v146_v12, 0.0 }
  0x27   :  { %v172_v36 = vadd.f32 %v171_v18, %v170_v13  ;;  %v196_v58 = vmul.f32 %v575_v62, %v508_v25  ;;  %v218_v29 = vsel %vm94_vm0, %v194_v2, 0.0  ;;  %v177_v32 = vsel %vm94_vm0, %v147_v3, 0.0 }
  0x28   :  { %v127_v15 = vadd.f32 %v126_v14, %v125_v9  ;;  %v215_v24 = vadd.f32 %v214_v35, %v213_v50  ;;  %v197_v21 = vmul.f32 %v577_v63, %v510_v26  ;;  %v220_v59 = vsel %vm94_vm0, %v195_v4, 0.0 }
  0x29   :  { %v174_v20 = vadd.f32 %v173_v19, %v172_v36  ;;  %v198_v39 = vmul.f32 %v584_v7, %v512_v27  ;;  %v222_v25 = vsel %vm94_vm0, %v196_v58, 0.0  ;;  %v199_v44 = vmul.f32 %v594_v22, %v514_v28 }
  0x2a   :  { %v128_v31 = vrot.slane %v127_v15, 2  ;;  %v217_v6 = vadd.f32 %v216_v37, %v215_v24  ;;  %v224_v43 = vsel %vm94_vm0, %v197_v21, 0.0  ;;  %v200_v48 = vmul.f32 %v599_v30, %v536_v40 }
  0x2b   :  { %v176_v41 = vadd.f32 %v175_v23, %v174_v20  ;;  %v226_v51 = vsel %vm94_vm0, %v198_v39, 0.0  ;;  %v228_v52 = vsel %vm94_vm0, %v199_v44, 0.0 }
  0x2c   :  { %v129_v33 = vadd.f32 %v128_v31, %v127_v15  ;;  %v219_v34 = vadd.f32 %v218_v29, %v217_v6  ;;  %v230_v28 = vsel %vm94_vm0, %v200_v48, 0.0 }
  0x2d   :  { %v178_v38 = vadd.f32 %v177_v32, %v176_v41 }
  0x2e   :  { %v130_v62 = vrot.slane %v129_v33, 1  ;;  %v221_v42 = vadd.f32 %v220_v59, %v219_v34 }
  0x2f   :  { %v179_v10 = vrot.slane %v178_v38, 4 }
  0x30   :  { %v131_v47 = vadd.f32 %v130_v62, %v129_v33  ;;  %v223_v26 = vadd.f32 %v222_v25, %v221_v42 }
  0x31   :  { %v180_v63 = vadd.f32 %v179_v10, %v178_v38 }
  0x32   :  { %v225_v54 = vadd.f32 %v224_v43, %v223_v26  ;;  %v242_v27 = vsub.f32 1.0, %v131_v47  ;;  %v265_v0 = vmul.f32 2.0, %v131_v47 }
  0x33   :  { %v181_v7 = vrot.slane %v180_v63, 2 }
  0x34   :  { %v227_v55 = vadd.f32 %v226_v51, %v225_v54  ;;  %v243_v16 = vmax.f32 %v242_v27, 1e-07  ;;  %v310_v27 = vlaneseq }
  0x35   :  { %v182_v45 = vadd.f32 %v181_v7, %v180_v63 }
  0x36   :  { %v229_v22 = vadd.f32 %v228_v52, %v227_v55  ;;  %412 = vrcp.f32 %v243_v16  ;;  %v311_v16 = vand.u32 127, %v310_v27 }
  0x37   :  { %v183_v56 = vrot.slane %v182_v45, 1 }
  0x38   :  { %v231_v57 = vadd.f32 %v230_v28, %v229_v22  ;;  %v297_v22 = vld [vmem:[%s715_s2] sm:$0x1]  ;;  %vm315_vm7 = vcmp.lt.s32.totalorder %v311_v16, 13 }
  0x39   :  { %v184_v60 = vadd.f32 %v183_v56, %v182_v45 }
  0x3a   :  { %v232_v61 = vrot.slane %v231_v57, 4 }
  0x3b   :  { %v244_v53 = vsub.f32 1.0, %v184_v60  ;;  %v238_v12 = vadd.f32 %v184_v60, %v131_v47  ;;  %v281_v13 = vmul.f32 2.0, %v184_v60 }
  0x3c   :  { %v233_v40 = vadd.f32 %v232_v61, %v231_v57 }
  0x3d   :  { %v245_v30 = vmax.f32 %v244_v53, 1e-07 }
  0x3e   :  { %v234_v17 = vrot.slane %v233_v40, 2 }
  0x3f   :  { %414 = vrcp.f32 %v245_v30 }
  0x40   :  { %v413_v46 = vpop.eup %412  ;;  %v235_v1 = vadd.f32 %v234_v17, %v233_v40  ;;  %v298_v40 = vld [vmem:[%s715_s2 + $0x1] sm:$0x1] }
  0x41   :  { %v266_v5 = vmul.f32 %v413_v46, %v265_v0 }
  0x42   :  { %v236_v8 = vrot.slane %v235_v1, 1 }
  0x43   :  { %v267_v11 = vmax.f32 %v266_v5, 0.0 }
  0x44   :  { %v237_v9 = vadd.f32 %v236_v8, %v235_v1 }
  0x45   :  { %v269_v18 = vadd.f32 2.0, %v267_v11  ;;  %v268_v41 = vadd.f32 1.0, %v267_v11 }
  0x46   :  { %v239_v49 = vmul.f32 2.0, %v237_v9 }
  0x47   :  { %v270_v2 = vmul.f32 %v269_v18, %v267_v11 }
  0x48   :  { %v240_v35 = vsub.f32 %v238_v12, %v239_v49 }
  0x49   :  { %v415_v14 = vpop.eup %414  ;;  %416 = vrsqrt.f32 %v270_v2  ;;  %vm273_vm1 = vcmp.eq.f32.partialorder %v270_v2, inf  ;;  %v276_v32 = vand.u32 2147483648, %v270_v2  ;;  %vm275_vm2 = vcmp.eq.f32.partialorder %v270_v2, 0.0 }
  0x4a   :  { %v241_v3 = vmax.f32 %v240_v35, 0.0  ;;  %v282_v19 = vmul.f32 %v415_v14, %v281_v13 }
  0x4c   :  { %v248_v50 = vmul.f32 2.0, %v241_v3  ;;  %v283_v36 = vmax.f32 %v282_v19, 0.0 }
  0x4e   :  { %v249_v4 = vmul.f32 %v413_v46, %v248_v50  ;;  %v285_v37 = vadd.f32 2.0, %v283_v36  ;;  %v284_v38 = vadd.f32 1.0, %v283_v36 }
  0x50   :  { %v250_v15 = vmul.f32 %v415_v14, %v249_v4  ;;  %v286_v23 = vmul.f32 %v285_v37, %v283_v36 }
  0x52   :  { %v251_v24 = vmax.f32 %v250_v15, 0.0  ;;  %418 = vrsqrt.f32 %v286_v23  ;;  %vm289_vm3 = vcmp.eq.f32.partialorder %v286_v23, inf  ;;  %v292_v33 = vand.u32 2147483648, %v286_v23 }
  0x53   :  { %v417_v20 = vpop.eup %416  ;;  %vm291_vm4 = vcmp.eq.f32.partialorder %v286_v23, 0.0 }
  0x54   :  { %v253_v58 = vadd.f32 2.0, %v251_v24  ;;  %v272_v29 = vmul.f32 %v417_v20, %v270_v2  ;;  %v252_v43 = vadd.f32 1.0, %v251_v24 }
  0x56   :  { %v254_v31 = vmul.f32 %v253_v58, %v251_v24  ;;  %v274_v6 = vsel %vm273_vm1, %v270_v2, %v272_v29 }
  0x57   :  { %v277_v21 = vsel %vm275_vm2, %v276_v32, %v274_v6 }
  0x58   :  { %420 = vrsqrt.f32 %v254_v31  ;;  %v278_v34 = vadd.f32 %v277_v21, %v268_v41  ;;  %vm257_vm5 = vcmp.eq.f32.partialorder %v254_v31, inf  ;;  %v260_v44 = vand.u32 2147483648, %v254_v31 }
  0x59   :  { %vm259_vm6 = vcmp.eq.f32.partialorder %v254_v31, 0.0 }
  0x5a   :  { %422 = vlog2.f32 %v278_v34 }
  0x5c   :  { %v419_v59 = vpop.eup %418 }
  0x5d   :  { %v288_v39 = vmul.f32 %v419_v59, %v286_v23 }
  0x5f   :  { %v290_v25 = vsel %vm289_vm3, %v286_v23, %v288_v39 }
  0x60   :  { %v293_v62 = vsel %vm291_vm4, %v292_v33, %v290_v25 }
  0x61   :  { %v294_v42 = vadd.f32 %v293_v62, %v284_v38 }
  0x62   :  { %v421_v10 = vpop.eup %420 }
  0x63   :  { %v256_v47 = vmul.f32 %v421_v10, %v254_v31  ;;  %424 = vlog2.f32 %v294_v42 }
  0x64   :  { %v423_v51 = vpop.eup %422 }
  0x65   :  { %v258_v26 = vsel %vm257_vm5, %v254_v31, %v256_v47  ;;  %v280_v7 = vmul.f32 0.6931472, %v423_v51 }
  0x66   :  { %v261_v63 = vsel %vm259_vm6, %v260_v44, %v258_v26 }
  0x67   :  { %v262_v48 = vadd.f32 %v261_v63, %v252_v43 }
  0x69   :  { %426 = vlog2.f32 %v262_v48 }
  0x6d   :  { %v425_v54 = vpop.eup %424 }
  0x6e   :  { %v296_v52 = vmul.f32 0.6931472, %v425_v54 }
  0x70   :  { %v306_v55 = vadd.f32 0.5, %v296_v52 }
  0x72   :  { %v307_v45 = vsub.f32 %v306_v55, %v280_v7 }
  0x73   :  { %v427_v28 = vpop.eup %426 }
  0x74   :  { %v264_v56 = vmul.f32 0.6931472, %v427_v28  ;;  %v308_v57 = vmax.f32 %v307_v45, 0.0 }
  0x76   :  { %v333_v60 = vadd.f32 -1.0, %v264_v56  ;;  %v302_v61 = vsub.f32 2.5, %v264_v56  ;;  %v309_v53 = vmul.f32 %v308_v57, %v297_v22 }
  0x78   :  { %v300_v30 = vmax.f32 %v333_v60, 0.0  ;;  %v303_v0 = vmax.f32 %v302_v61, 0.0  ;;  %v317_v17 = vsel %vm315_vm7, %v309_v53, 0.0 }
  0x79   :  { %v319_v5 = vrot.slane %v317_v17, 7 }
  0x7a   :  { %v301_v46 = vmul.f32 %v300_v30, %v297_v22  ;;  %v304_v1 = vmul.f32 %v303_v0, %v298_v40 }
  0x7c   :  { %v305_v8 = vadd.f32 %v304_v1, %v301_v46 }
  0x7e   :  { %v316_v11 = vsel %vm315_vm7, %v305_v8, 0.0 }
  0x7f   :  { %v322_v9 = vsel %vm321_vm8, %v316_v11, %v319_v5 }
  0x80   :  { %v324_v12 = vsel %vm323_vm9, %v322_v9, 0.0 }
  0x81   :  { %325 = vadd.xlane.f32.xlu0 %v324_v12 }
 0x10e   :  { %v326_v18 = vpop.xlane.xlu0 %325 }
 0x10f   :  { %328 = vst.msk [vmem:[%s716_s3] sm:$0x3] %vm327_vm10, %v326_v18 }

</bundles_post_ra>
